<compile_context>
chip_gen: v6e
topology: v6e:2x2x1
jax: 0.10.0
libtpu: 0.0.40
codegen_flags: <defaults>
</compile_context>

<pallas_src>
import functools

import jax
import jax.numpy as jnp
import numpy as np
from jax.experimental import pallas as pl
from jax.experimental.pallas import tpu as pltpu


def _round_up(x, m):
    return ((x + m - 1) // m) * m


# -----------------------------------------------------------------------------
# Generation-aware VMEM configuration
# -----------------------------------------------------------------------------
@functools.lru_cache(maxsize=None)
def _vmem_config():
    cap = None
    try:
        info = pltpu.get_tpu_info()
        cap = getattr(info, "vmem_capacity_bytes", None)
    except Exception:
        cap = None
    if cap is None:
        cap = 64 * 1024 * 1024          # conservative (v7x-sized) fallback
    if cap <= 64 * 1024 * 1024:
        # v7x-like: 64 MiB per TensorCore, 2 TCs sharded via the "parallel"
        # dst axis -> keep >= 4 grid steps so neither core idles.
        return {"budget": 40 * 1024 * 1024, "limit": 56 * 1024 * 1024,
                "cap_rows": 512, "min_steps": 4}
    # v5e / v6e: 128 MiB physical VMEM -> let tiles grow.
    return {"budget": 96 * 1024 * 1024, "limit": 100 * 1024 * 1024,
            "cap_rows": 2048, "min_steps": 1}


# -----------------------------------------------------------------------------
# Kernel 1: fused src-side projection  [feat_src | e_src | pad] = src @ W_fused
# -----------------------------------------------------------------------------
def _src_projection_kernel(src_ref, w_fused_ref, out_ref):
    out_ref[...] = jnp.dot(src_ref[...], w_fused_ref[...],
                           preferred_element_type=jnp.float32
                           ).astype(out_ref.dtype)


def _project_src(src_bf16, w_fused_bf16, *, tile_src, vmem_limit):
    n_src, in_dim = src_bf16.shape
    fused_pad = w_fused_bf16.shape[1]
    grid = (pl.cdiv(n_src, tile_src),)
    return pl.pallas_call(
        _src_projection_kernel,
        out_shape=jax.ShapeDtypeStruct((n_src, fused_pad), jnp.bfloat16),
        grid_spec=pltpu.PrefetchScalarGridSpec(
            num_scalar_prefetch=0,
            grid=grid,
            in_specs=[pl.BlockSpec((tile_src, in_dim), lambda i: (i, 0)),
                      pl.BlockSpec((in_dim, fused_pad), lambda i: (0, 0))],
            out_specs=pl.BlockSpec((tile_src, fused_pad), lambda i: (i, 0))),
        compiler_params=pltpu.CompilerParams(
            dimension_semantics=("parallel",),
            vmem_limit_bytes=vmem_limit),
    )(src_bf16, w_fused_bf16)


# -----------------------------------------------------------------------------
# Kernel 2: dst-tiled masked edge softmax + neighbour aggregation + ReLU
# -----------------------------------------------------------------------------
def _relation_attention_kernel(dst_ref, wscore_dst_ref, feat_src_ref,
                               e_src_t_ref, adj_ref, out_ref,
                               *, n_heads, hidden, neg_slope):
    d = dst_ref[...]                                           # (T, in) bf16
    e_dst = jnp.dot(d, wscore_dst_ref[...],
                    preferred_element_type=jnp.float32)        # (T, H)  f32

    adj_f = adj_ref[...].astype(jnp.float32)                   # (T, Ns) 0/1
    add_mask = (adj_f - 1.0) * jnp.float32(1e30)               # 0 on edges, -1e30 off
    # Zero destination rows without incident edges (exp(-1e30)==0 already
    # kills non-edge columns; this handles all-zero rows -> output 0).
    has_edge = (jnp.sum(adj_f, axis=-1, keepdims=True)
                > 0.0).astype(jnp.float32)                     # (T, 1)

    feat_src = feat_src_ref[...]                               # (Ns, fused_pad) bf16
    e_src_t = e_src_t_ref[...]                                 # (H, Ns) f32

    hd = n_heads * hidden
    for h in range(n_heads):                                   # H small -> static unroll
        e = e_dst[:, h:h + 1] + e_src_t[h:h + 1, :]            # (T, Ns)
        e = jnp.maximum(e, neg_slope * e)                      # LeakyReLU (slope < 1)
        e = e + add_mask                                       # additive mask, once
        e_max = jnp.max(e, axis=-1, keepdims=True)
        p = jnp.exp(e - e_max)                                 # exactly 0 off-edge
        denom = jnp.sum(p, axis=-1, keepdims=True)             # (T, 1) f32
        recip = pl.reciprocal(jnp.maximum(denom, jnp.float32(1e-20)),
                              approx=True) * has_edge          # (T, 1)
        out_h = jnp.dot(p.astype(jnp.bfloat16),                # bf16 MXU, f32 accum
                        feat_src[:, h * hidden:(h + 1) * hidden],
                        preferred_element_type=jnp.float32)    # (T, hidden)
        # Normalise AFTER the matmul (per-row scale over hidden, not Ns), then
        # write this head's columns of the VMEM out block directly.
        out_ref[:, h * hidden:(h + 1) * hidden] = jnp.maximum(out_h * recip, 0.0)
    if out_ref.shape[1] > hd:                                  # zero lane padding
        out_ref[:, hd:] = jnp.zeros(
            (out_ref.shape[0], out_ref.shape[1] - hd), jnp.float32)


def _pick_dst_tile(n_dst, n_src, in_dim, n_heads, hidden, hd_pad, fused_pad,
                   *, budget_bytes, cap_rows, min_steps):
    """Largest dst tile (multiple of 32) whose live VMEM working set fits the
    per-generation budget, optionally capped so the parallel dst grid has at
    least `min_steps` steps (keeps both v7x TensorCores busy)."""
    resident = 2 * (n_src * fused_pad * 2        # fused feat_src/e_src (bf16, dbl-buf)
                    + n_heads * n_src * 4        # e_src_t (f32)
                    + in_dim * n_heads * 2)      # wscore_dst (bf16)
    per_row = (2 * in_dim * 2                    # dst rows (bf16, dbl-buf)
               + 2 * n_src                       # adj (int8, dbl-buf)
               + 2 * hd_pad * 4                  # out block (f32, dbl-buf)
               + 4 * n_src * 4                   # live f32 (T, Ns) planes (e/p/mask)
               + n_src * 2                       # bf16 softmax numerator for MXU
               + 4 * (n_heads + hidden) * 4)     # small per-row vectors
    avail = max(budget_bytes - resident, 32 * per_row)
    tile = max(32, min(cap_rows, (avail // per_row) // 32 * 32))
    if min_steps > 1 and n_dst > 32:
        tile = min(tile, max(32, _round_up(-(-n_dst // min_steps), 32)))
    return int(min(tile, _round_up(max(n_dst, 1), 32)))


def relation_graph_conv(src_feat, dst_feat, w_src, w_dst, rel_emb, rel_w, adj,
                        *, n_heads, hidden, neg_slope=0.2):
    """One RelationGraphConv forward pass on a dense relation graph."""
    n_src, in_dim = src_feat.shape
    n_dst = dst_feat.shape[0]
    hd = n_heads * hidden
    hd_pad = _round_up(hd, 128)
    fused_pad = _round_up(hd + n_heads, 128)
    cfg = _vmem_config()

    # Fold the relation attention vector a = rel_emb @ rel_w into per-node
    # score projection matrices so attention logits are MXU matmuls in-kernel.
    rel_attn = jnp.dot(rel_emb.reshape(1, -1).astype(jnp.float32),
                       rel_w.astype(jnp.float32)).reshape(n_heads, 2 * hidden)
    a_dst = rel_attn[:, :hidden]                               # (H, D)
    a_src = rel_attn[:, hidden:]                               # (H, D)
    wscore_src = jnp.einsum(
        'khd,hd->kh',
        w_src.astype(jnp.float32).reshape(in_dim, n_heads, hidden), a_src)
    wscore_dst = jnp.einsum(
        'khd,hd->kh',
        w_dst.astype(jnp.float32).reshape(in_dim, n_heads, hidden), a_dst)

    # Fused, lane-dense src weight: [W_src | wscore_src | 0-pad].
    parts = [w_src.astype(jnp.float32), wscore_src]
    if fused_pad > hd + n_heads:
        parts.append(jnp.zeros((in_dim, fused_pad - hd - n_heads), jnp.float32))
    w_fused = jnp.concatenate(parts, axis=1).astype(jnp.bfloat16)

    src_bf16 = src_feat.astype(jnp.bfloat16)
    dst_bf16 = dst_feat.astype(jnp.bfloat16)
    adj_i8 = adj.astype(jnp.int8)                              # 0/1 mask, 4x smaller

    # ---- Phase 1: fused src projection, computed once (not per dst tile). ----
    tile_src = min(cfg["cap_rows"], _round_up(max(n_src, 1), 32))
    fused_src = _project_src(src_bf16, w_fused, tile_src=tile_src,
                             vmem_limit=cfg["limit"])          # (n_src, fused_pad) bf16
    e_src_t = fused_src[:, hd:hd + n_heads].astype(jnp.float32).T  # (H, n_src) f32

    # ---- Phase 2: dst-tiled masked edge softmax + aggregation. ----
    tile_dst = _pick_dst_tile(n_dst, n_src, in_dim, n_heads, hidden,
                              hd_pad, fused_pad,
                              budget_bytes=cfg["budget"],
                              cap_rows=cfg["cap_rows"],
                              min_steps=cfg["min_steps"])
    grid = (pl.cdiv(n_dst, tile_dst),)
    kernel = functools.partial(_relation_attention_kernel,
                               n_heads=n_heads, hidden=hidden,
                               neg_slope=neg_slope)
    cost = pl.CostEstimate(
        flops=int(2 * n_dst * in_dim * n_heads                 # e_dst
                  + 2 * n_dst * n_src * hd                     # aggregation
                  + 6 * n_dst * n_src * n_heads),              # softmax VPU work
        transcendentals=int(n_dst * n_src * n_heads),
        bytes_accessed=int(n_dst * n_src                       # adj (int8)
                           + 2 * n_src * fused_pad             # fused src feats (bf16)
                           + 4 * n_heads * n_src               # e_src_t (f32)
                           + 2 * n_dst * in_dim                # dst feats (bf16)
                           + 4 * n_dst * hd_pad))              # output (f32)
    out_pad = pl.pallas_call(
        kernel,
        out_shape=jax.ShapeDtypeStruct((n_dst, hd_pad), jnp.float32),
        grid_spec=pltpu.PrefetchScalarGridSpec(
            num_scalar_prefetch=0,
            grid=grid,
            in_specs=[pl.BlockSpec((tile_dst, in_dim), lambda i: (i, 0)),
                      pl.BlockSpec((in_dim, n_heads), lambda i: (0, 0)),
                      pl.BlockSpec((n_src, fused_pad), lambda i: (0, 0)),
                      pl.BlockSpec((n_heads, n_src), lambda i: (0, 0)),
                      pl.BlockSpec((tile_dst, n_src), lambda i: (i, 0))],
            out_specs=pl.BlockSpec((tile_dst, hd_pad), lambda i: (i, 0))),
        compiler_params=pltpu.CompilerParams(
            dimension_semantics=("parallel",),
            vmem_limit_bytes=cfg["limit"]),
        cost_estimate=cost,
    )(dst_bf16, wscore_dst.astype(jnp.bfloat16), fused_src, e_src_t, adj_i8)
    return out_pad[:, :hd] if hd_pad != hd else out_pad


# -----------------------------------------------------------------------------
# HeteroGraphConv: dispatcher over relations (plain-Python glue, as in PyTorch)
# -----------------------------------------------------------------------------
def hetero_graph_conv(canonical_etypes, adjacency, input_src, input_dst,
                      relation_embedding, node_transformation_weight,
                      relation_transformation_weight, *, n_heads, hidden):
    # Build reverse-relation map, exactly as in the PyTorch forward.
    reverse_relation_dict = {}
    for srctype, reltype, dsttype in list(input_src.keys()):
        for stype, etype, dtype in input_src:
            if stype == dsttype and dtype == srctype and etype != reltype:
                reverse_relation_dict[reltype] = etype
                break

    # Single batched host sync for the "skip relations with no edges" check.
    rels = list(canonical_etypes)
    edge_counts = jax.device_get(
        jnp.stack([jnp.sum(adjacency[r]) for r in rels]))

    outputs = {}
    for rel, cnt in zip(rels, edge_counts):
        if float(cnt) == 0.0:                      # no edges -> module not called
            continue
        stype, etype, dtype = rel
        src_feat = input_src[(dtype, reverse_relation_dict[etype], stype)]
        dst_feat = input_dst[rel]
        outputs[rel] = relation_graph_conv(
            src_feat, dst_feat,
            node_transformation_weight[stype],   # src node transformation weight
            node_transformation_weight[dtype],   # dst node transformation weight
            relation_embedding[etype],
            relation_transformation_weight[etype],
            adjacency[rel], n_heads=n_heads, hidden=hidden)
    return outputs


# -----------------------------------------------------------------------------
# Pure-JAX reference (mirrors DGL semantics) for a sanity check
# -----------------------------------------------------------------------------
def _reference_relation_conv(src_feat, dst_feat, w_src, w_dst,
                             rel_emb, rel_w, adj, *, n_heads, hidden,
                             neg_slope=0.2):
    fs = (src_feat @ w_src).reshape(-1, n_heads, hidden)
    fd = (dst_feat @ w_dst).reshape(-1, n_heads, hidden)
    ra = (rel_emb.reshape(1, -1) @ rel_w).reshape(n_heads, 2 * hidden)
    e_dst = jnp.sum(fd * ra[:, :hidden][None], axis=-1)        # (Nd, H)
    e_src = jnp.sum(fs * ra[:, hidden:][None], axis=-1)        # (Ns, H)
    e = e_dst[:, None, :] + e_src[None, :, :]                  # (Nd, Ns, H)
    e = jnp.where(e > 0, e, neg_slope * e)
    mask = (adj > 0)[:, :, None]
    e = jnp.where(mask, e, -1e30)
    p = jnp.exp(e - jnp.max(e, axis=1, keepdims=True))
    p = jnp.where(mask, p, 0.0)
    denom = jnp.sum(p, axis=1, keepdims=True)
    a = p / jnp.maximum(denom, 1e-20)
    out = jnp.einsum("dsh,shk->dhk", a, fs).reshape(-1, n_heads * hidden)
    return jax.nn.relu(out)


# -----------------------------------------------------------------------------
# Driver
# -----------------------------------------------------------------------------
if __name__ == "__main__":
    key = jax.random.PRNGKey(0)
    ks = jax.random.split(key, 12)

    # Small heterogeneous graph: 2 node types, 2 (mutually reverse) relations.
    N_USER, N_ITEM = 12, 10
    IN_DIM, HIDDEN, HEADS, REL_DIM = 16, 16, 4, 8

    canonical_etypes = [("user", "buys", "item"), ("item", "bought_by", "user")]

    # Dense adjacency masks: adj[(s,e,d)] has shape (N_dst, N_src).
    a_ui = jax.random.bernoulli(ks[0], 0.4, (N_ITEM, N_USER)).astype(jnp.float32)
    adjacency = {("user", "buys", "item"): a_ui,
                 ("item", "bought_by", "user"): a_ui.T}

    # Relation-specific node features: value shape = (num dst nodes, IN_DIM).
    feats_buys = jax.random.normal(ks[1], (N_ITEM, IN_DIM), jnp.float32)
    feats_bought = jax.random.normal(ks[2], (N_USER, IN_DIM), jnp.float32)
    input_src = {("user", "buys", "item"): feats_buys,
                 ("item", "bought_by", "user"): feats_bought}
    input_dst = input_src  # as in R_HGNN (same relation->dst-feature dict)

    relation_embedding = {
        "buys": jax.random.normal(ks[3], (REL_DIM,), jnp.float32),
        "bought_by": jax.random.normal(ks[4], (REL_DIM,), jnp.float32),
    }
    node_transformation_weight = {
        "user": jax.random.normal(ks[5], (IN_DIM, HEADS * HIDDEN), jnp.float32) * 0.1,
        "item": jax.random.normal(ks[6], (IN_DIM, HEADS * HIDDEN), jnp.float32) * 0.1,
    }
    relation_transformation_weight = {
        "buys": jax.random.normal(ks[7], (REL_DIM, HEADS * 2 * HIDDEN), jnp.float32) * 0.1,
        "bought_by": jax.random.normal(ks[8], (REL_DIM, HEADS * 2 * HIDDEN), jnp.float32) * 0.1,
    }

    outputs = hetero_graph_conv(
        canonical_etypes, adjacency, input_src, input_dst,
        relation_embedding, node_transformation_weight,
        relation_transformation_weight, n_heads=HEADS, hidden=HIDDEN)
    jax.block_until_ready(outputs)

    # Check against the pure-f32 reference (kernel uses bf16 operands -> 2e-2 tol).
    rev = {"buys": "bought_by", "bought_by": "buys"}
    for (stype, etype, dtype), got in outputs.items():
        ref = _reference_relation_conv(
            input_src[(dtype, rev[etype], stype)], input_dst[(stype, etype, dtype)],
            node_transformation_weight[stype], node_transformation_weight[dtype],
            relation_embedding[etype], relation_transformation_weight[etype],
            adjacency[(stype, etype, dtype)], n_heads=HEADS, hidden=HIDDEN)
        assert got.shape == (input_dst[(stype, etype, dtype)].shape[0], HEADS * HIDDEN)
        np.testing.assert_allclose(np.asarray(got), np.asarray(ref),
                                   rtol=2e-2, atol=2e-2)

    print("KERNEL_OK")
</pallas_src>

<mosaic_0001>
module attributes {stable_mosaic.version = 11 : i64} {
  func.func @_src_projection_kernel(%arg0: i32, %arg1: memref<32x16xbf16, #tpu.memory_space<vmem>>, %arg2: memref<16x128xbf16, #tpu.memory_space<vmem>>, %arg3: memref<32x128xbf16, #tpu.memory_space<vmem>>) attributes {dimension_semantics = [#tpu.dimension_semantics<parallel>], iteration_bounds = array<i64: 1>, scalar_prefetch = 0 : i64, scratch_operands = 0 : i64, tpu.core_type = #tpu.core_type<tc>, window_params = [{transform_indices = @transform_0, window_bounds = array<i64: 32, 16>}, {pipeline_mode = #tpu.pipeline_mode<synchronous>, transform_indices = @transform_1, window_bounds = array<i64: 16, 128>}, {transform_indices = @transform_2, window_bounds = array<i64: 32, 128>}]} {
    %c0 = arith.constant 0 : index
    %c0_0 = arith.constant 0 : index
    %0 = vector.load %arg1[%c0, %c0_0] : memref<32x16xbf16, #tpu.memory_space<vmem>>, vector<32x16xbf16>
    %c0_1 = arith.constant 0 : index
    %c0_2 = arith.constant 0 : index
    %1 = vector.load %arg2[%c0_1, %c0_2] : memref<16x128xbf16, #tpu.memory_space<vmem>>, vector<16x128xbf16>
    %cst = arith.constant dense<0.000000e+00> : vector<32x128xf32>
    %2 = tpu.matmul %0, %1, %cst {dimension_numbers = #tpu.dot_dimension_numbers<[1], [0], [0], [1], [0, 0, 1, 1], [], []>} : vector<32x16xbf16>, vector<16x128xbf16>, vector<32x128xf32> -> vector<32x128xf32>
    %3 = arith.truncf %2 : vector<32x128xf32> to vector<32x128xbf16>
    %c0_3 = arith.constant 0 : index
    %c0_4 = arith.constant 0 : index
    %4 = vector.load %arg3[%c0_3, %c0_4] : memref<32x128xbf16, #tpu.memory_space<vmem>>, vector<32x128xbf16>
    tpu.vector_store %arg3[%c0_3, %c0_4], %3 {strides = array<i32>} : memref<32x128xbf16, #tpu.memory_space<vmem>>, vector<32x128xbf16>,
    return
  }
  func.func @transform_0(%arg0: i32) -> (i32, i32) {
    %c0_i32 = arith.constant 0 : i32
    %c0_i32_0 = arith.constant 0 : i32
    return %arg0, %c0_i32 : i32, i32
  }
  func.func @transform_1(%arg0: i32) -> (i32, i32) {
    %c0_i32 = arith.constant 0 : i32
    %c0_i32_0 = arith.constant 0 : i32
    %c0_i32_1 = arith.constant 0 : i32
    return %c0_i32, %c0_i32_0 : i32, i32
  }
  func.func @transform_2(%arg0: i32) -> (i32, i32) {
    %c0_i32 = arith.constant 0 : i32
    %c0_i32_0 = arith.constant 0 : i32
    return %arg0, %c0_i32 : i32, i32
  }
}

</mosaic_0001>

<bundles_post_ra>
// kernel: tpu_custom_call.1
= control target key start
LH: loop header
LB: loop body
LE: loop exit
PB: predicated region body
PF: predicated region fallthrough
CT: control target
= control target key end

     0   :  { %7 = vsyncpa [#allocation3], 0  ;;  %s302_s0 = inlined_call_operand.hbm [shape: bf16[12,16], index: 0, kind: input, shape index: {}]   ;;  %s303_s1 = inlined_call_operand.hbm [shape: bf16[16,128], index: 1, kind: input, shape index: {}]   ;;  %s304_s2 = inlined_call_operand.hbm [shape: bf16[12,128], index: 2, kind: output, shape index: {}]  }
   0x1   :  { %8 = vsyncpa [#allocation6], 0 }
   0x2   :  { %9 = vsyncpa [#allocation4], 0 }
   0x3   :  { %14 = vsyncadd [#allocation3], 128  ;;  %s264_s9 = smov [#allocation2]  }
   0x4   :  { %s15_s10 = sshll.u32 %s264_s9, 4  ;;  %s16_s10 = int_to_ptr.vmem [resolvable:$true] %s15_s10 }
   0x5   :  { %s206_s11 = scalar_lea.vmem %s16_s10, 128  ;;  %s210_s12 = scalar_lea.vmem %s16_s10, 256 }
   0x6   :  { %p207_p0 = scmp.ne.s32.totalorder %s16_s10, %s206_s11  ;;  %p211_p1 = scmp.lt.s32.totalorder %s16_s10, %s16_s10 }
   0x7   :  { %p212_p2 = scmp.lt.s32.totalorder %s210_s12, %s206_s11 }
   0x9   :  { %p213_p3 = por %p212_p2, %p211_p1 }
   0xb   :  { %p214_p4 = pnand %p213_p3, %p207_p0 }
   0xd   :  { %217 = shalt.err (!%p214_p4)
}
   0xe   :  { %s265_s13 = smov 64   ;;  %s266_s14 = smov 4  }
   0xf   :  { %21 = dma.hbm_to_vmem [thread:$0]  %s302_s0, 128, %s16_s10, [#allocation3], %s265_s13, %s265_s13, %s266_s14  }
  0x10   :  { %s267_s17 = smov [#allocation5]  }
  0x11   :  { %s27_s18 = sshll.u32 %s267_s17, 4  ;;  %s28_s18 = int_to_ptr.vmem [resolvable:$true] %s27_s18 }
  0x12   :  { %s226_s19 = scalar_lea.vmem %s28_s18, 128  ;;  %p231_p6 = scmp.lt.s32.totalorder %s28_s18, %s28_s18 }
  0x13   :  { %p227_p5 = scmp.ne.s32.totalorder %s28_s18, %s226_s19  ;;  %p232_p7 = scmp.lt.s32.totalorder %s226_s19, %s226_s19 }
  0x15   :  { %p233_p8 = por %p232_p7, %p231_p6 }
  0x17   :  { %p234_p9 = pnand %p233_p8, %p227_p5 }
  0x19   :  { %237 = shalt.err (!%p234_p9)
}
  0x1a   :  { %33 = dma.hbm_to_vmem [thread:$0]  %s303_s1, 128, %s28_s18, [#allocation6], %s265_s13, %s265_s13, %s266_s14  }
  0x1b   :  { %258 = dma.done.wait [#allocation3], 256  }
  0x1c   :  { %259 = vsyncadd [#allocation3], 4294967040 }
  0x1d   :  { %260 = dma.done.wait [#allocation6], 128  }
  0x1e   :  { %261 = vsyncadd [#allocation6], 4294967168  ;;  %v195_v0 = vld [vmem:[#allocation5] sm:$0xff]   ;;  %vm63_vm0 = vcmask 130048   ;;  %v196_v1 = vld [vmem:[#allocation2] sm:$0xff]  }
  0x1f   :  { %184 = vmatprep.subr.bf16.mxu0 %v195_v0  ;;  %v197_v2 = vld [vmem:[#allocation2 + $0x8] sm:$0xff]   ;;  %186 = vmatprep.mubr.msk.bf16.mxu0 %vm63_vm0, %v196_v1 }
  0x20   :  { %185 = vmatpush3.bf16.msra.mxu0 %v195_v0 }
  0x23   :  { %187 = vmatmul.mubr.msk.bf16.vlgmr.msra.gmra.mxu0 %vm63_vm0, %v197_v2 }
  0xe3   :  { %v188_v3 = vpop.f32.mrf.mxu0 }
  0xe5   :  { %v104_v4 = vpop.f32.mrf.mxu0 }
  0xe7   :  { %v189_v5 = vpop.f32.mrf.mxu0 }
  0xe8   :  { %v178_v6 = vpack.c.bf16 %v189_v5, %v188_v3 }
  0xe9   :  { %v107_v7 = vpop.f32.mrf.mxu0 }
  0xea   :  { %180 = vst [vmem:[#allocation7 + $0x8] sm:$0xff] %v178_v6   ;;  %v173_v8 = vpack.c.bf16 %v107_v7, %v104_v4 }
  0xec   :  { %174 = vst [vmem:[#allocation7] sm:$0xff] %v173_v8  }
  0xed   :  { %143 = vsyncadd [#allocation4], 128  ;;  %s268_s0 = smov [#allocation7]  }
  0xee   :  { %s144_s1 = sshll.u32 %s268_s0, 4  ;;  %s145_s1 = int_to_ptr.vmem [resolvable:$true] %s144_s1 }
  0xef   :  { %s238_s22 = scalar_lea.vmem %s145_s1, 128  ;;  %s242_s23 = scalar_lea.vmem %s145_s1, 256 }
  0xf0   :  { %p239_p10 = scmp.ne.s32.totalorder %s145_s1, %s238_s22  ;;  %p243_p11 = scmp.lt.s32.totalorder %s145_s1, %s145_s1 }
  0xf1   :  { %p244_p12 = scmp.lt.s32.totalorder %s242_s23, %s238_s22 }
  0xf3   :  { %p245_p13 = por %p244_p12, %p243_p11 }
  0xf5   :  { %p246_p0 = pnand %p245_p13, %p239_p10 }
  0xf7   :  { %249 = shalt.err (!%p246_p0)
}
  0xf8   :  { %150 = dma.vmem_to_hbm [thread:$0]  %s145_s1, 128, %s304_s2, [#allocation4], %s265_s13, %s265_s13, %s266_s14  }
  0xf9   :  { %262 = dma.done.wait [#allocation4], 256  }
  0xfa   :  { %263 = vsyncadd [#allocation4], 4294967040 }
  0xfb   :  { %154 = vsyncpa [#allocation3], 1 }
  0xfc   :  { %155 = vsyncpa [#allocation6], 1 }
  0xfd   :  { %156 = vsyncpa [#allocation4], 1 }

</bundles_post_ra>
